<compile_context>
chip_gen: v7x
topology: tpu7x:2x2x1
jax: 0.10.0
libtpu: 0.0.40
codegen_flags: <defaults>
</compile_context>

<pallas_src>
import functools

import jax
import jax.numpy as jnp
from jax.experimental import pallas as pl
from jax.experimental.pallas import tpu as pltpu

_LANES = 128     # lane width of a vreg
_ROWS = 1024     # rows per grid step -> (1024, 128) f32 tile = 512 KiB / input


def _bce_kernel(pred_ref, tgt_ref, out_ref, acc_ref, *,
                block_rows, n_valid, inv_count):
    i = pl.program_id(0)

    @pl.when(i == 0)
    def _():
        acc_ref[...] = jnp.zeros_like(acc_ref)

    # In-kernel validity mask: global element index vs. true element count.
    # (int32 index math: fine for < 2**31 elements, plenty for loss inputs.)
    row_ids = jax.lax.broadcasted_iota(jnp.int32, (block_rows, _LANES), 0)
    lane_ids = jax.lax.broadcasted_iota(jnp.int32, (block_rows, _LANES), 1)
    global_idx = (i * block_rows + row_ids) * _LANES + lane_ids
    valid = global_idx < n_valid

    # Zero out-of-range inputs *before* any arithmetic so whatever the
    # partial-block DMA left in the OOB region of the VMEM buffer can never
    # contaminate the sum (e.g. via NaN/inf).
    x = jnp.where(valid, pred_ref[...].astype(jnp.float32), 0.0)
    y = jnp.where(valid, tgt_ref[...].astype(jnp.float32), 0.0)

    # Numerically stable BCE-with-logits (matches torch.nn.BCEWithLogitsLoss):
    #   loss = max(x, 0) - x*y + log(1 + exp(-|x|))
    loss = jnp.maximum(x, 0.0) - x * y + jnp.log1p(jnp.exp(-jnp.abs(x)))
    loss = jnp.where(valid, loss, 0.0)

    # Reduce (block_rows, 128) -> (8, 128) with elementwise vreg adds (VALU);
    # the cross-lane/sublane reduce runs exactly once, on the last step.
    partial = loss.reshape(block_rows // 8, 8, _LANES).sum(axis=0)
    acc_ref[...] += partial

    @pl.when(i == pl.num_programs(0) - 1)
    def _():
        out_ref[...] = jnp.sum(acc_ref[...], keepdims=True) * inv_count


def bce_with_logits_mean(predictions, targets):
    """Equivalent of nn.BCEWithLogitsLoss(reduction='mean')(predictions, targets)."""
    assert predictions.shape == targets.shape
    n_elems = predictions.size

    pred_flat = predictions.reshape(-1)
    tgt_flat = targets.reshape(-1)

    # Only copy-pad when numel isn't already (8*128)-aligned; the common case
    # (e.g. NCHW with H*W a multiple of 128) needs no HBM copy at all.  Tile
    # granularity padding is handled in-kernel by the iota mask instead.
    align = 8 * _LANES
    rem = n_elems % align
    if rem:
        pad = align - rem
        pred_flat = jnp.pad(pred_flat, (0, pad))
        tgt_flat = jnp.pad(tgt_flat, (0, pad))

    n_rows = pred_flat.shape[0] // _LANES
    block_rows = min(_ROWS, n_rows)          # always a multiple of 8
    grid = (pl.cdiv(n_rows, block_rows),)    # last block may be partial

    pred2d = pred_flat.reshape(n_rows, _LANES)
    tgt2d = tgt_flat.reshape(n_rows, _LANES)

    kernel = functools.partial(
        _bce_kernel,
        block_rows=block_rows,
        n_valid=n_elems,
        inv_count=1.0 / float(n_elems),
    )

    out = pl.pallas_call(
        kernel,
        out_shape=jax.ShapeDtypeStruct((1, 1), jnp.float32),
        grid_spec=pltpu.PrefetchScalarGridSpec(
            num_scalar_prefetch=0,
            grid=grid,
            in_specs=[
                pl.BlockSpec((block_rows, _LANES), lambda i: (i, 0)),
                pl.BlockSpec((block_rows, _LANES), lambda i: (i, 0)),
            ],
            out_specs=pl.BlockSpec((1, 1), lambda i: (0, 0)),
            scratch_shapes=[pltpu.VMEM((8, _LANES), jnp.float32)],
        ),
        compiler_params=pltpu.CompilerParams(
            dimension_semantics=("arbitrary",),
        ),
    )(pred2d, tgt2d)

    return out[0, 0]  # 0-d scalar, like torch's returned loss tensor


if __name__ == "__main__":
    key = jax.random.PRNGKey(0)
    k1, k2 = jax.random.split(key)

    # Small NCHW shapes consistent with a typical segmentation-style usage.
    shape = (2, 4, 16, 16)
    predictions = jax.random.normal(k1, shape, dtype=jnp.float32)  # logits
    targets = jax.random.bernoulli(k2, p=0.5, shape=shape).astype(jnp.float32)

    loss = bce_with_logits_mean(predictions, targets)
    jax.block_until_ready(loss)

    # Pure-JAX reference (same math as torch.nn.BCEWithLogitsLoss, mean).
    x = predictions.astype(jnp.float32)
    y = targets.astype(jnp.float32)
    ref = jnp.mean(jnp.maximum(x, 0.0) - x * y + jnp.log1p(jnp.exp(-jnp.abs(x))))
    assert jnp.allclose(loss, ref, atol=1e-5, rtol=1e-5), (loss, ref)

    print("KERNEL_OK")
</pallas_src>

<mosaic_0001>
module attributes {stable_mosaic.version = 11 : i64} {
  func.func @_bce_kernel(%arg0: i32, %arg1: memref<16x128xf32, #tpu.memory_space<vmem>>, %arg2: memref<16x128xf32, #tpu.memory_space<vmem>>, %arg3: memref<1x1xf32, #tpu.memory_space<vmem>>, %arg4: memref<8x128xf32, #tpu.memory_space<vmem>>) attributes {dimension_semantics = [#tpu.dimension_semantics<arbitrary>], iteration_bounds = array<i64: 1>, scalar_prefetch = 0 : i64, scratch_operands = 1 : i64, tpu.core_type = #tpu.core_type<tc>, window_params = [{transform_indices = @transform_0, window_bounds = array<i64: 16, 128>}, {transform_indices = @transform_1, window_bounds = array<i64: 16, 128>}, {pipeline_mode = #tpu.pipeline_mode<synchronous>, transform_indices = @transform_2, window_bounds = array<i64: 1, 1>}]} {
    %c0_i32 = arith.constant 0 : i32
    %0 = arith.cmpi eq, %arg0, %c0_i32 : i32
    %1 = arith.extui %0 : i1 to i32
    %c0_i32_0 = arith.constant 0 : i32
    %2 = arith.cmpi ne, %1, %c0_i32_0 : i32
    scf.if %2 {
      %cst_15 = arith.constant 0.000000e+00 : f32
      %39 = vector.broadcast %cst_15 : f32 to vector<8x128xf32>
      %c0_16 = arith.constant 0 : index
      %c0_17 = arith.constant 0 : index
      %40 = vector.load %arg4[%c0_16, %c0_17] : memref<8x128xf32, #tpu.memory_space<vmem>>, vector<8x128xf32>
      tpu.vector_store %arg4[%c0_16, %c0_17], %39 {strides = array<i32>} : memref<8x128xf32, #tpu.memory_space<vmem>>, vector<8x128xf32>,
    } else {
    }
    %3 = tpu.iota {dimensions = array<i32: 0>} : vector<16x128xi32>
    %4 = tpu.iota {dimensions = array<i32: 1>} : vector<16x128xi32>
    %c16_i32 = arith.constant 16 : i32
    %5 = arith.muli %arg0, %c16_i32 : i32
    %6 = vector.broadcast %5 : i32 to vector<16x128xi32>
    %7 = arith.addi %6, %3 : vector<16x128xi32>
    %c128_i32 = arith.constant 128 : i32
    %8 = vector.broadcast %c128_i32 : i32 to vector<16x128xi32>
    %9 = arith.muli %7, %8 : vector<16x128xi32>
    %10 = arith.addi %9, %4 : vector<16x128xi32>
    %c2048_i32 = arith.constant 2048 : i32
    %11 = vector.broadcast %c2048_i32 : i32 to vector<16x128xi32>
    %12 = arith.cmpi slt, %10, %11 : vector<16x128xi32>
    %c0 = arith.constant 0 : index
    %c0_1 = arith.constant 0 : index
    %13 = vector.load %arg1[%c0, %c0_1] : memref<16x128xf32, #tpu.memory_space<vmem>>, vector<16x128xf32>
    %cst = arith.constant 0.000000e+00 : f32
    %14 = vector.broadcast %cst : f32 to vector<16x128xf32>
    %15 = arith.select %12, %13, %14 : vector<16x128xi1>, vector<16x128xf32>
    %c0_2 = arith.constant 0 : index
    %c0_3 = arith.constant 0 : index
    %16 = vector.load %arg2[%c0_2, %c0_3] : memref<16x128xf32, #tpu.memory_space<vmem>>, vector<16x128xf32>
    %cst_4 = arith.constant 0.000000e+00 : f32
    %17 = vector.broadcast %cst_4 : f32 to vector<16x128xf32>
    %18 = arith.select %12, %16, %17 : vector<16x128xi1>, vector<16x128xf32>
    %cst_5 = arith.constant 0.000000e+00 : f32
    %19 = vector.broadcast %cst_5 : f32 to vector<16x128xf32>
    %20 = arith.maximumf %15, %19 : vector<16x128xf32>
    %21 = arith.mulf %15, %18 : vector<16x128xf32>
    %22 = arith.subf %20, %21 : vector<16x128xf32>
    %23 = math.absf %15 : vector<16x128xf32>
    %cst_6 = arith.constant 0.000000e+00 : f32
    %24 = vector.broadcast %cst_6 : f32 to vector<16x128xf32>
    %25 = arith.subf %24, %23 : vector<16x128xf32>
    %26 = math.exp %25 : vector<16x128xf32>
    %27 = math.log1p %26 : vector<16x128xf32>
    %28 = arith.addf %22, %27 : vector<16x128xf32>
    %cst_7 = arith.constant 0.000000e+00 : f32
    %29 = vector.broadcast %cst_7 : f32 to vector<16x128xf32>
    %30 = arith.select %12, %28, %29 : vector<16x128xi1>, vector<16x128xf32>
    %31 = vector.shape_cast %30 : vector<16x128xf32> to vector<2x8x128xf32>
    %cst_8 = arith.constant dense<0.000000e+00> : vector<8x128xf32>
    %32 = vector.multi_reduction <add>, %31, %cst_8 [0] : vector<2x8x128xf32> to vector<8x128xf32>
    %c0_9 = arith.constant 0 : index
    %c0_10 = arith.constant 0 : index
    %33 = vector.load %arg4[%c0_9, %c0_10] : memref<8x128xf32, #tpu.memory_space<vmem>>, vector<8x128xf32>
    %34 = arith.addf %33, %32 : vector<8x128xf32>
    %c0_11 = arith.constant 0 : index
    %c0_12 = arith.constant 0 : index
    %35 = vector.load %arg4[%c0_11, %c0_12] : memref<8x128xf32, #tpu.memory_space<vmem>>, vector<8x128xf32>
    tpu.vector_store %arg4[%c0_11, %c0_12], %34 {strides = array<i32>} : memref<8x128xf32, #tpu.memory_space<vmem>>, vector<8x128xf32>,
    %c0_i32_13 = arith.constant 0 : i32
    %36 = arith.cmpi eq, %arg0, %c0_i32_13 : i32
    %37 = arith.extui %36 : i1 to i32
    %c0_i32_14 = arith.constant 0 : i32
    %38 = arith.cmpi ne, %37, %c0_i32_14 : i32
    scf.if %38 {
      %c0_15 = arith.constant 0 : index
      %c0_16 = arith.constant 0 : index
      %39 = vector.load %arg4[%c0_15, %c0_16] : memref<8x128xf32, #tpu.memory_space<vmem>>, vector<8x128xf32>
      %40 = vector.shape_cast %39 : vector<8x128xf32> to vector<1x8x128xf32>
      %cst_17 = arith.constant dense<0.000000e+00> : vector<1xf32>
      %41 = vector.multi_reduction <add>, %40, %cst_17 [1, 2] : vector<1x8x128xf32> to vector<1xf32>
      %42 = vector.shape_cast %41 : vector<1xf32> to vector<1x1x1xf32>
      %43 = vector.extract %42[0, 0, 0] : f32 from vector<1x1x1xf32>
      %44 = vector.broadcast %43 : f32 to vector<1x1xf32>
      %cst_18 = arith.constant 4.8828125E-4 : f32
      %45 = vector.broadcast %cst_18 : f32 to vector<1x1xf32>
      %46 = arith.mulf %44, %45 : vector<1x1xf32>
      %c0_19 = arith.constant 0 : index
      %c0_20 = arith.constant 0 : index
      %47 = vector.load %arg3[%c0_19, %c0_20] : memref<1x1xf32, #tpu.memory_space<vmem>>, vector<1x1xf32>
      tpu.vector_store %arg3[%c0_19, %c0_20], %46 {strides = array<i32>} : memref<1x1xf32, #tpu.memory_space<vmem>>, vector<1x1xf32>,
    } else {
    }
    return
  }
  func.func @transform_0(%arg0: i32) -> (i32, i32) {
    %c0_i32 = arith.constant 0 : i32
    %c0_i32_0 = arith.constant 0 : i32
    return %arg0, %c0_i32 : i32, i32
  }
  func.func @transform_1(%arg0: i32) -> (i32, i32) {
    %c0_i32 = arith.constant 0 : i32
    %c0_i32_0 = arith.constant 0 : i32
    return %arg0, %c0_i32 : i32, i32
  }
  func.func @transform_2(%arg0: i32) -> (i32, i32) {
    %c0_i32 = arith.constant 0 : i32
    %c0_i32_0 = arith.constant 0 : i32
    %c0_i32_1 = arith.constant 0 : i32
    return %c0_i32, %c0_i32_0 : i32, i32
  }
}

</mosaic_0001>

<bundles_post_ra>
// kernel: tpu_custom_call.1
= control target key start
LH: loop header
LB: loop body
LE: loop exit
PB: predicated region body
PF: predicated region fallthrough
CT: control target
= control target key end

     0   :  { %7 = vsyncpa [#allocation4], 0  ;;  %s290_s0 = inlined_call_operand.hbm [shape: f32[16,128], index: 0, kind: input, shape index: {}]   ;;  %s291_s1 = inlined_call_operand.hbm [shape: f32[16,128], index: 1, kind: input, shape index: {}]   ;;  %s292_s2 = inlined_call_operand.hbm [shape: f32[1,1], index: 2, kind: output, shape index: {}]  }
   0x1   :  { %8 = vsyncpa [#allocation7], 0 }
   0x2   :  { %9 = vsyncpa [#allocation5], 0  ;;  %s228_s9 = smov [#allocation3]   ;;  %s156_s13 = scalar_lea.hbm %s290_s0, 256 }
   0x3   :  { %s15_s10 = sshll.u32 %s228_s9, 4  ;;  %p157_p0 = scmp.ne.s32.totalorder %s290_s0, %s156_s13  ;;  %s16_s10 = int_to_ptr.vmem [resolvable:$true] %s15_s10 }
   0x4   :  { %p160_p1 = scmp.lt.u32.totalorder %s156_s13, %s290_s0 }
   0x6   :  { %p162_p2 = pnand %p160_p1, %p157_p0 }
   0x8   :  { %165 = shalt.err (!%p162_p2)
}
   0x9   :  { %s166_s18 = scalar_lea.vmem %s16_s10, 256  ;;  %p171_p4 = scmp.lt.s32.totalorder %s16_s10, %s16_s10 }
   0xa   :  { %p167_p3 = scmp.ne.s32.totalorder %s16_s10, %s166_s18  ;;  %p172_p5 = scmp.lt.s32.totalorder %s166_s18, %s166_s18 }
   0xc   :  { %p173_p6 = por %p172_p5, %p171_p4 }
   0xe   :  { %p174_p7 = pnand %p173_p6, %p167_p3 }
  0x10   :  { %177 = shalt.err (!%p174_p7)
}
  0x11   :  { %s229_s19 = smov 128   ;;  %s230_s20 = smov 8  }
  0x12   :  { %21 = dma.hbm_to_vmem [thread:$0]  %s290_s0, 256, %s16_s10, [#allocation4], %s229_s19, %s229_s19, %s230_s20  }
  0x13   :  { %s231_s23 = smov [#allocation6]   ;;  %s178_s27 = scalar_lea.hbm %s291_s1, 256 }
  0x14   :  { %s27_s24 = sshll.u32 %s231_s23, 4  ;;  %p179_p8 = scmp.ne.s32.totalorder %s291_s1, %s178_s27  ;;  %s28_s24 = int_to_ptr.vmem [resolvable:$true] %s27_s24 }
  0x15   :  { %p182_p9 = scmp.lt.u32.totalorder %s178_s27, %s291_s1 }
  0x17   :  { %p184_p10 = pnand %p182_p9, %p179_p8 }
  0x19   :  { %187 = shalt.err (!%p184_p10)
}
  0x1a   :  { %s188_s4 = scalar_lea.vmem %s28_s24, 256  ;;  %p193_p12 = scmp.lt.s32.totalorder %s28_s24, %s28_s24 }
  0x1b   :  { %p189_p11 = scmp.ne.s32.totalorder %s28_s24, %s188_s4  ;;  %p194_p13 = scmp.lt.s32.totalorder %s188_s4, %s188_s4 }
  0x1d   :  { %p195_p0 = por %p194_p13, %p193_p12 }
  0x1f   :  { %p196_p1 = pnand %p195_p0, %p189_p11 }
  0x21   :  { %199 = shalt.err (!%p196_p1)
}
  0x22   :  { %33 = dma.hbm_to_vmem [thread:$0]  %s291_s1, 256, %s28_s24, [#allocation7], %s229_s19, %s229_s19, %s230_s20  }
  0x23   :  { %222 = dma.done.wait [#allocation4], 256  }
  0x24   :  { %223 = vsyncadd [#allocation4], 4294967040 }
  0x25   :  { %224 = dma.done.wait [#allocation7], 256  }
  0x26   :  { %225 = vsyncadd [#allocation7], 4294967040  ;;  %v45_v0 = vlaneseq  ;;  %v60_v7 = vld [vmem:[#allocation3] sm:$0xff]  ;;  %v61_v9 = vld [vmem:[#allocation3 + $0x8] sm:$0xff]  ;;  %s232_s1 = smov [#allocation8]   ;;  %vm123_vm4 = vcmask 0  }
  0x27   :  { %v64_v22 = vld [vmem:[#allocation6] sm:$0xff]  ;;  %v65_v23 = vld [vmem:[#allocation6 + $0x8] sm:$0xff]  ;;  %s131_s6 = sshll.u32 %s232_s1, 4  ;;  %s132_s6 = int_to_ptr.vmem [resolvable:$true] %s131_s6 }
  0x28   :  { %v46_v1 = vshrl.u32 %v45_v0, 7  ;;  %v49_v2 = vand.u32 127, %v45_v0  ;;  %s200_s8 = scalar_lea.vmem %s132_s6, 16  ;;  %s204_s9 = scalar_lea.vmem %s132_s6, 32 }
  0x29   :  { %p201_p2 = scmp.ne.s32.totalorder %s132_s6, %s200_s8  ;;  %p205_p3 = scmp.lt.s32.totalorder %s132_s6, %s132_s6 }
  0x2a   :  { %v47_v3 = vadd.s32 8, %v46_v1  ;;  %v54_v4 = vmul.u32 128, %v46_v1  ;;  %p206_p4 = scmp.lt.s32.totalorder %s204_s9, %s200_s8 }
  0x2c   :  { %v55_v5 = vmul.u32 128, %v47_v3  ;;  %v56_v6 = vadd.s32 %v54_v4, %v49_v2  ;;  %p207_p5 = por %p206_p4, %p205_p3 }
  0x2e   :  { %v57_v8 = vadd.s32 %v55_v5, %v49_v2  ;;  %vm58_vm0 = vcmp.lt.s32.totalorder %v56_v6, 2048  ;;  %p208_p6 = pnand %p207_p5, %p201_p2 }
  0x2f   :  { %v62_v10 = vsel %vm58_vm0, %v60_v7, 0.0  ;;  %v66_v26 = vsel %vm58_vm0, %v64_v22, 0.0 }
  0x30   :  { %vm59_vm1 = vcmp.lt.s32.totalorder %v57_v8, 2048  ;;  %v74_v11 = vand.u32 2147483647, %v62_v10  ;;  %v68_v29 = vmax.f32 %v62_v10, 0.0  ;;  %v70_v30 = vmul.f32 %v66_v26, %v62_v10 }
  0x31   :  { %v63_v12 = vsel %vm59_vm1, %v61_v9, 0.0  ;;  %v67_v27 = vsel %vm59_vm1, %v65_v23, 0.0 }
  0x32   :  { %v75_v13 = vand.u32 2147483647, %v63_v12  ;;  %v76_v14 = vsub.f32 0.0, %v74_v11  ;;  %v69_v33 = vmax.f32 %v63_v12, 0.0  ;;  %v71_v34 = vmul.f32 %v67_v27, %v63_v12 }
  0x33   :  { %v72_v38 = vsub.f32 %v68_v29, %v70_v30 }
  0x34   :  { %v77_v15 = vsub.f32 0.0, %v75_v13  ;;  %v78_v16 = vmul.f32 1.442695, %v76_v14  ;;  %v73_v41 = vsub.f32 %v69_v33, %v71_v34 }
  0x36   :  { %v80_v17 = vmul.f32 1.442695, %v77_v15  ;;  %148 = vpow2.f32 %v78_v16 }
  0x38   :  { %150 = vpow2.f32 %v80_v17 }
  0x40   :  { %v149_v18 = vpop.eup %148 }
  0x41   :  { %v82_v20 = vadd.f32 1.0, %v149_v18  ;;  %v85_v24 = vmul.f32 -0.5, %v149_v18  ;;  %v88_v31 = vand.u32 2147483647, %v149_v18 }
  0x42   :  { %v151_v19 = vpop.eup %150 }
  0x43   :  { %v91_v21 = vadd.f32 1.0, %v151_v19  ;;  %152 = vlog2.f32 %v82_v20  ;;  %v94_v25 = vmul.f32 -0.5, %v151_v19  ;;  %v86_v28 = vadd.f32 1.0, %v85_v24 }
  0x44   :  { %v97_v35 = vand.u32 2147483647, %v151_v19  ;;  %vm89_vm2 = vcmp.lt.f32.partialorder %v88_v31, 0.0004427343 }
  0x45   :  { %154 = vlog2.f32 %v91_v21  ;;  %v95_v32 = vadd.f32 1.0, %v94_v25  ;;  %v87_v36 = vmul.f32 %v149_v18, %v86_v28 }
  0x46   :  { %vm98_vm3 = vcmp.lt.f32.partialorder %v97_v35, 0.0004427343 }
  0x47   :  { %v96_v39 = vmul.f32 %v151_v19, %v95_v32 }
  0x4d   :  { %v153_v37 = vpop.eup %152 }
  0x4e   :  { %v84_v42 = vmul.f32 0.6931472, %v153_v37 }
  0x4f   :  { %v155_v40 = vpop.eup %154 }
  0x50   :  { %v93_v43 = vmul.f32 0.6931472, %v155_v40  ;;  %v90_v44 = vsel %vm89_vm2, %v87_v36, %v84_v42 }
  0x51   :  { %v100_v46 = vadd.f32 %v90_v44, %v72_v38 }
  0x52   :  { %v99_v45 = vsel %vm98_vm3, %v96_v39, %v93_v43 }
  0x53   :  { %v101_v47 = vadd.f32 %v99_v45, %v73_v41  ;;  %v102_v48 = vsel %vm58_vm0, %v100_v46, 0.0 }
  0x55   :  { %v103_v49 = vsel %vm59_vm1, %v101_v47, 0.0 }
  0x56   :  { %v104_v50 = vadd.f32 %v103_v49, %v102_v48 }
  0x58   :  { %112 = vadd.xlane.f32.xlu0 %v104_v50 }
  0xe5   :  { %v113_v51 = vpop.xlane.xlu0 %112 }
  0xe6   :  { %v114_v52 = vrot.slane %v113_v51, 4 }
  0xe8   :  { %v115_v53 = vadd.f32 %v114_v52, %v113_v51 }
  0xea   :  { %v116_v54 = vrot.slane %v115_v53, 2 }
  0xec   :  { %v117_v55 = vadd.f32 %v116_v54, %v115_v53 }
  0xee   :  { %v118_v56 = vrot.slane %v117_v55, 1 }
  0xf0   :  { %v119_v57 = vadd.f32 %v118_v56, %v117_v55 }
  0xf2   :  { %141 = vpush %v119_v57 }
 0x123   :  { %s142_s7 = spop %141 }
 0x124   :  { %v121_v58 = vstv %s142_s7 }
 0x125   :  { %v122_v59 = vmul.f32 0.00048828125, %v121_v58 }
 0x127   :  { %124 = vst.msk [vmem:[#allocation8] sm:$0x1] %vm123_vm4, %v122_v59 }
 0x128   :  { %211 = shalt.err (!%p208_p6)
}
 0x129   :  { %s212_s12 = scalar_lea.hbm %s292_s2, 16 }
 0x12a   :  { %p213_p7 = scmp.ne.s32.totalorder %s292_s2, %s212_s12  ;;  %p216_p8 = scmp.lt.u32.totalorder %s212_s12, %s292_s2 }
 0x12c   :  { %p218_p9 = pnand %p216_p8, %p213_p7 }
 0x12e   :  { %221 = shalt.err (!%p218_p9)
}
 0x12f   :  { %134 = dma.vmem_to_hbm [thread:$0]  %s132_s6, 16, %s292_s2, [#allocation5]  }
 0x130   :  { %226 = dma.done.wait [#allocation5], 16  }
 0x131   :  { %227 = vsyncadd [#allocation5], 4294967280 }
 0x132   :  { %138 = vsyncpa [#allocation4], 1 }
 0x133   :  { %139 = vsyncpa [#allocation7], 1 }
 0x134   :  { %140 = vsyncpa [#allocation5], 1 }

</bundles_post_ra>
